<compile_context>
chip_gen: v7x
topology: tpu7x:2x2x1
jax: 0.10.0
libtpu: 0.0.40
codegen_flags: <defaults>
</compile_context>

<pallas_src>
import functools
import math

import jax
import jax.numpy as jnp
from jax.experimental import pallas as pl
from jax.experimental.pallas import tpu as pltpu


def _attnpool_kernel(x_ref, pos0_ref, possp_ref,
                     wq_ref, bq_ref, wk_ref, bk_ref,
                     mh_ref, mht_ref, wv_ref, bv_ref,
                     wc_ref, bc_ref,
                     o_ref, *, scale2):
    """One grid step handles TB batch elements, fully in VMEM.

    x_ref    : (TB, C, T0)   native NCHW-flattened input (channels on sublanes)
    pos0_ref : (1, C)        positional embedding of the mean token
    possp_ref: (C, T0)       positional embedding of the spatial tokens
    wq_ref   : (C, C)        Q weights, transposed  (in_ch x out_ch)
    bq_ref   : (1, C)
    wk_ref   : (C, C)        K weights, original orientation (out_ch x in_ch)
    bk_ref   : (1, C)
    mh_ref   : (C, Hh)       head membership  M[c, h] = [c // ch == h]
    mht_ref  : (Hh, C)       its transpose
    wv_ref   : (C, C)        V weights, transposed  (in_ch x out_ch)
    bv_ref   : (1, C)
    wc_ref   : (C, Cout)     output projection, transposed
    bc_ref   : (1, Cout)
    o_ref    : (TB, 1, Cout)
    """
    TB, C, T0 = x_ref.shape
    Hh = mht_ref.shape[0]

    x = x_ref[...].astype(jnp.float32)                       # (TB, C, T0)
    pos_sp = possp_ref[...].astype(jnp.float32)              # (C, T0)
    pos0 = pos0_ref[...].astype(jnp.float32)                 # (1, C)
    mht = mht_ref[...]                                       # (Hh, C)

    # --- token build (fused: mean token + positional embedding) ---
    tok_sp = x + pos_sp[None, :, :]                          # (TB, C, T0)
    tok0 = jnp.mean(x, axis=2) + pos0                        # (TB, C)

    # --- Q only for token 0 (the only query the output depends on) ---
    q0 = jnp.dot(tok0, wq_ref[...],
                 preferred_element_type=jnp.float32) + bq_ref[...]      # (TB, C)
    q0s = q0 * scale2                                        # scale applied once as scale^2

    # --- fold per-head masking of q into the K weights:
    #     r[b, h, :] = sum_{c in head h} q0s[b, c] * Wk[c, :]   (Hh rows, not T0+1)
    g = (q0s[:, None, :] * mht[None, :, :]).reshape(TB * Hh, C)
    r = jnp.dot(g, wk_ref[...],
                preferred_element_type=jnp.float32).reshape(TB, Hh, C)
    sk = jnp.dot(q0s * bk_ref[...], mh_ref[...],
                 preferred_element_type=jnp.float32)         # (TB, Hh) bias part of q.k

    # --- per-head scores for the single query over the T0 + 1 keys ---
    s_sp = jnp.einsum('bhc,bct->bht', r, tok_sp,
                      preferred_element_type=jnp.float32) + sk[:, :, None]  # (TB, Hh, T0)
    s0 = jnp.sum(r * tok0[:, None, :], axis=2) + sk                         # (TB, Hh)

    # --- softmax over the T0 + 1 keys, per head ---
    m = jnp.maximum(jnp.max(s_sp, axis=2), s0)               # (TB, Hh)
    p_sp = jnp.exp(s_sp - m[:, :, None])                     # (TB, Hh, T0)
    p0 = jnp.exp(s0 - m)                                     # (TB, Hh)
    denom = p0 + jnp.sum(p_sp, axis=2)                       # (TB, Hh)

    # --- mix the tokens with the attention weights BEFORE the V projection ---
    pbar = jnp.einsum('bht,bct->bhc', p_sp, tok_sp,
                      preferred_element_type=jnp.float32)    # (TB, Hh, C)
    pbar = pbar + p0[:, :, None] * tok0[:, None, :]
    pbar = pbar / denom[:, :, None]

    # --- V projection of the Hh mixed tokens; each channel selects its head ---
    y = jnp.dot(pbar.reshape(TB * Hh, C), wv_ref[...],
                preferred_element_type=jnp.float32).reshape(TB, Hh, C)
    a = jnp.sum(y * mht[None, :, :], axis=1) + bv_ref[...]   # (TB, C)

    # --- output projection (token 0 only) ---
    out = jnp.dot(a, wc_ref[...],
                  preferred_element_type=jnp.float32) + bc_ref[...]     # (TB, Cout)
    o_ref[...] = out[:, None, :].astype(o_ref.dtype)


def attention_pool_2d_forward(x_nchw, pos_emb, w_qkv, b_qkv, w_c, b_c,
                              num_heads, *, batch_tile=None):
    """Forward pass of AttentionPool2d.

    x_nchw : (B, C, H, W)
    pos_emb: (C, H*W + 1)
    w_qkv  : (3C, C)   (1x1 conv weight, kernel dim already squeezed)
    b_qkv  : (3C,)
    w_c    : (Cout, C)
    b_c    : (Cout,)
    Returns (B, Cout).
    """
    B, C, H, W = x_nchw.shape
    T0 = H * W
    assert pos_emb.shape == (C, T0 + 1)
    assert w_qkv.shape == (3 * C, C)
    Cout = w_c.shape[0]
    assert C % num_heads == 0
    ch = C // num_heads
    scale2 = 1.0 / math.sqrt(ch)            # (1/sqrt(sqrt(ch)))**2, applied once

    # Native layout: (B, C, T0) is just a reshape of NCHW -> no HBM transpose.
    x_ct = x_nchw.reshape(B, C, T0)

    # Positional embedding split: mean-token column vs spatial columns
    # (split in the wrapper so the kernel never slices an unaligned lane).
    pos0 = pos_emb[:, 0].reshape(1, C)                               # (1, C)
    pos_sp = pos_emb[:, 1:]                                          # (C, T0)

    # qkv_proj split.  Q and V are applied from the right -> pre-transpose once
    # (tiny, weight-sized).  K is consumed in its original orientation.
    wq_t = jnp.transpose(w_qkv[0:C, :])                              # (C, C)
    wk = w_qkv[C:2 * C, :]                                           # (C, C)
    wv_t = jnp.transpose(w_qkv[2 * C:3 * C, :])                      # (C, C)
    bq = b_qkv[0:C].reshape(1, C)
    bk = b_qkv[C:2 * C].reshape(1, C)
    bv = b_qkv[2 * C:3 * C].reshape(1, C)

    wc_t = jnp.transpose(w_c)                                        # (C, Cout)
    bc = b_c.reshape(1, Cout)

    # Head-membership matrix: M[c, h] = 1 iff channel c belongs to head h.
    head_of_c = jnp.arange(C, dtype=jnp.int32) // ch
    m_heads = (head_of_c[:, None] ==
               jnp.arange(num_heads, dtype=jnp.int32)[None, :]).astype(jnp.float32)
    m_heads_t = jnp.transpose(m_heads)                               # (Hh, C)

    # --- VMEM sizing & batch-tile selection (bigger block -> fewer grid steps,
    #     ~0.35 us per-step overhead amortized) ---
    f32b = 4
    lane = 128
    t0_pad = -(-T0 // lane) * lane
    c_pad = -(-C // lane) * lane
    cout_pad = -(-Cout // lane) * lane
    per_batch = 5 * C * t0_pad * f32b            # x (double-buffered) + tok_sp + temps
    fixed = 2 * f32b * (3 * C * c_pad            # Wq, Wk, Wv
                        + C * cout_pad           # Wc
                        + C * t0_pad             # pos_sp
                        + C * lane               # m_heads (lane-padded)
                        + (num_heads + 8) * c_pad + 8 * cout_pad)    # mht, biases, pos0
    budget = 24 << 20                            # safe for v5e/v6e/v7x scoped VMEM
    if batch_tile is None:
        avail = max(0, budget - fixed)
        cap = max(1, avail // max(per_batch, 1))
        batch_tile = max(d for d in range(1, B + 1) if B % d == 0 and d <= cap)
    TB = int(batch_tile)
    assert B % TB == 0
    vmem_limit = int(min(max(fixed + TB * per_batch + (4 << 20), 8 << 20), 48 << 20))

    kernel = functools.partial(_attnpool_kernel, scale2=scale2)

    out = pl.pallas_call(
        kernel,
        out_shape=jax.ShapeDtypeStruct((B, 1, Cout), x_nchw.dtype),
        grid_spec=pltpu.PrefetchScalarGridSpec(
            num_scalar_prefetch=0,
            grid=(B // TB,),
            in_specs=[
                pl.BlockSpec((TB, C, T0), lambda b: (b, 0, 0)),      # x (native layout)
                pl.BlockSpec((1, C), lambda b: (0, 0)),              # pos0
                pl.BlockSpec((C, T0), lambda b: (0, 0)),             # pos spatial
                pl.BlockSpec((C, C), lambda b: (0, 0)),              # Wq^T
                pl.BlockSpec((1, C), lambda b: (0, 0)),              # bq
                pl.BlockSpec((C, C), lambda b: (0, 0)),              # Wk
                pl.BlockSpec((1, C), lambda b: (0, 0)),              # bk
                pl.BlockSpec((C, num_heads), lambda b: (0, 0)),      # M heads
                pl.BlockSpec((num_heads, C), lambda b: (0, 0)),      # M heads^T
                pl.BlockSpec((C, C), lambda b: (0, 0)),              # Wv^T
                pl.BlockSpec((1, C), lambda b: (0, 0)),              # bv
                pl.BlockSpec((C, Cout), lambda b: (0, 0)),           # Wc^T
                pl.BlockSpec((1, Cout), lambda b: (0, 0)),           # bc
            ],
            out_specs=pl.BlockSpec((TB, 1, Cout), lambda b: (b, 0, 0)),
        ),
        compiler_params=pltpu.CompilerParams(
            dimension_semantics=("parallel",),
            vmem_limit_bytes=vmem_limit),
    )(x_ct, pos0, pos_sp, wq_t, bq, wk, bk, m_heads, m_heads_t,
      wv_t, bv, wc_t, bc)

    return out.reshape(B, Cout)


def _reference_forward(x_nchw, pos_emb, w_qkv, b_qkv, w_c, b_c, num_heads):
    """Pure-JAX reference mirroring the PyTorch AttentionPool2d forward."""
    B, C, H, W = x_nchw.shape
    T0 = H * W
    ch = C // num_heads

    xf = x_nchw.reshape(B, C, T0)
    xm = jnp.concatenate([xf.mean(axis=-1, keepdims=True), xf], axis=-1)  # (B, C, T)
    xm = xm + pos_emb[None]

    qkv = jnp.einsum('oc,bct->bot', w_qkv, xm) + b_qkv[None, :, None]     # (B, 3C, T)
    q, k, v = jnp.split(qkv, 3, axis=1)

    scale = 1.0 / math.sqrt(math.sqrt(ch))
    T = T0 + 1
    qh = (q * scale).reshape(B * num_heads, ch, T)
    kh = (k * scale).reshape(B * num_heads, ch, T)
    vh = v.reshape(B * num_heads, ch, T)

    w = jnp.einsum('bct,bcs->bts', qh, kh)
    w = jax.nn.softmax(w.astype(jnp.float32), axis=-1)
    a = jnp.einsum('bts,bcs->bct', w, vh).reshape(B, C, T)

    out = jnp.einsum('oc,bct->bot', w_c, a) + b_c[None, :, None]
    return out[:, :, 0]


if __name__ == "__main__":
    # Module config: spacial_dim=8, embed_dim=32, num_heads_channels=8, output_dim=16.
    B, C, S = 2, 32, 8
    NUM_HEAD_CH = 8
    NUM_HEADS = C // NUM_HEAD_CH
    COUT = 16

    key = jax.random.PRNGKey(0)
    kx, kp, kw1, kb1, kw2, kb2 = jax.random.split(key, 6)

    x = jax.random.normal(kx, (B, C, S, S), dtype=jnp.float32)
    pos_emb = jax.random.normal(kp, (C, S * S + 1), dtype=jnp.float32) / C ** 0.5
    # nn.Conv1d(C, 3C, 1) / nn.Conv1d(C, Cout, 1) parameter shapes, kernel dim squeezed.
    w_qkv = 0.1 * jax.random.normal(kw1, (3 * C, C, 1), dtype=jnp.float32)[..., 0]
    b_qkv = 0.1 * jax.random.normal(kb1, (3 * C,), dtype=jnp.float32)
    w_c = 0.1 * jax.random.normal(kw2, (COUT, C, 1), dtype=jnp.float32)[..., 0]
    b_c = 0.1 * jax.random.normal(kb2, (COUT,), dtype=jnp.float32)

    y = attention_pool_2d_forward(x, pos_emb, w_qkv, b_qkv, w_c, b_c, NUM_HEADS)
    y = jax.block_until_ready(y)

    y_ref = _reference_forward(x, pos_emb, w_qkv, b_qkv, w_c, b_c, NUM_HEADS)
    assert y.shape == (B, COUT), y.shape
    max_err = float(jnp.max(jnp.abs(y - y_ref)))
    assert jnp.allclose(y, y_ref, atol=2e-4, rtol=2e-4), max_err

    # TODO(synk): a bf16-activation variant (f32 accumulation) would halve HBM/VMEM
    #             traffic on v6e/v7x but is kept f32 here to match the f32 reference.
    print("KERNEL_OK")
</pallas_src>

<mosaic_0001>
module attributes {stable_mosaic.version = 11 : i64} {
  func.func @_attnpool_kernel(%arg0: i32, %arg1: memref<2x32x64xf32, #tpu.memory_space<vmem>>, %arg2: memref<1x32xf32, #tpu.memory_space<vmem>>, %arg3: memref<32x64xf32, #tpu.memory_space<vmem>>, %arg4: memref<32x32xf32, #tpu.memory_space<vmem>>, %arg5: memref<1x32xf32, #tpu.memory_space<vmem>>, %arg6: memref<32x32xf32, #tpu.memory_space<vmem>>, %arg7: memref<1x32xf32, #tpu.memory_space<vmem>>, %arg8: memref<32x4xf32, #tpu.memory_space<vmem>>, %arg9: memref<4x32xf32, #tpu.memory_space<vmem>>, %arg10: memref<32x32xf32, #tpu.memory_space<vmem>>, %arg11: memref<1x32xf32, #tpu.memory_space<vmem>>, %arg12: memref<32x16xf32, #tpu.memory_space<vmem>>, %arg13: memref<1x16xf32, #tpu.memory_space<vmem>>, %arg14: memref<2x1x16xf32, #tpu.memory_space<vmem>>) attributes {dimension_semantics = [#tpu.dimension_semantics<parallel>], iteration_bounds = array<i64: 1>, scalar_prefetch = 0 : i64, scratch_operands = 0 : i64, tpu.core_type = #tpu.core_type<tc>, window_params = [{transform_indices = @transform_0, window_bounds = array<i64: 2, 32, 64>}, {pipeline_mode = #tpu.pipeline_mode<synchronous>, transform_indices = @transform_1, window_bounds = array<i64: 1, 32>}, {pipeline_mode = #tpu.pipeline_mode<synchronous>, transform_indices = @transform_2, window_bounds = array<i64: 32, 64>}, {pipeline_mode = #tpu.pipeline_mode<synchronous>, transform_indices = @transform_3, window_bounds = array<i64: 32, 32>}, {pipeline_mode = #tpu.pipeline_mode<synchronous>, transform_indices = @transform_4, window_bounds = array<i64: 1, 32>}, {pipeline_mode = #tpu.pipeline_mode<synchronous>, transform_indices = @transform_5, window_bounds = array<i64: 32, 32>}, {pipeline_mode = #tpu.pipeline_mode<synchronous>, transform_indices = @transform_6, window_bounds = array<i64: 1, 32>}, {pipeline_mode = #tpu.pipeline_mode<synchronous>, transform_indices = @transform_7, window_bounds = array<i64: 32, 4>}, {pipeline_mode = #tpu.pipeline_mode<synchronous>, transform_indices = @transform_8, window_bounds = array<i64: 4, 32>}, {pipeline_mode = #tpu.pipeline_mode<synchronous>, transform_indices = @transform_9, window_bounds = array<i64: 32, 32>}, {pipeline_mode = #tpu.pipeline_mode<synchronous>, transform_indices = @transform_10, window_bounds = array<i64: 1, 32>}, {pipeline_mode = #tpu.pipeline_mode<synchronous>, transform_indices = @transform_11, window_bounds = array<i64: 32, 16>}, {pipeline_mode = #tpu.pipeline_mode<synchronous>, transform_indices = @transform_12, window_bounds = array<i64: 1, 16>}, {transform_indices = @transform_13, window_bounds = array<i64: 2, 1, 16>}]} {
    %c0 = arith.constant 0 : index
    %c0_0 = arith.constant 0 : index
    %c0_1 = arith.constant 0 : index
    %0 = vector.load %arg1[%c0, %c0_0, %c0_1] : memref<2x32x64xf32, #tpu.memory_space<vmem>>, vector<2x32x64xf32>
    %c0_2 = arith.constant 0 : index
    %c0_3 = arith.constant 0 : index
    %1 = vector.load %arg3[%c0_2, %c0_3] : memref<32x64xf32, #tpu.memory_space<vmem>>, vector<32x64xf32>
    %c0_4 = arith.constant 0 : index
    %c0_5 = arith.constant 0 : index
    %2 = vector.load %arg2[%c0_4, %c0_5] : memref<1x32xf32, #tpu.memory_space<vmem>>, vector<1x32xf32>
    %c0_6 = arith.constant 0 : index
    %c0_7 = arith.constant 0 : index
    %3 = vector.load %arg9[%c0_6, %c0_7] : memref<4x32xf32, #tpu.memory_space<vmem>>, vector<4x32xf32>
    %4 = vector.shape_cast %1 : vector<32x64xf32> to vector<1x32x64xf32>
    %5 = vector.broadcast %4 : vector<1x32x64xf32> to vector<2x32x64xf32>
    %6 = arith.addf %0, %5 : vector<2x32x64xf32>
    %cst = arith.constant dense<0.000000e+00> : vector<2x32xf32>
    %7 = vector.multi_reduction <add>, %0, %cst [2] : vector<2x32x64xf32> to vector<2x32xf32>
    %cst_8 = arith.constant 6.400000e+01 : f32
    %8 = vector.broadcast %cst_8 : f32 to vector<2x32xf32>
    %9 = arith.divf %7, %8 : vector<2x32xf32>
    %10 = vector.broadcast %2 : vector<1x32xf32> to vector<2x32xf32>
    %11 = arith.addf %9, %10 : vector<2x32xf32>
    %c0_9 = arith.constant 0 : index
    %c0_10 = arith.constant 0 : index
    %12 = vector.load %arg4[%c0_9, %c0_10] : memref<32x32xf32, #tpu.memory_space<vmem>>, vector<32x32xf32>
    %cst_11 = arith.constant dense<0.000000e+00> : vector<2x32xf32>
    %13 = tpu.matmul %11, %12, %cst_11 {dimension_numbers = #tpu.dot_dimension_numbers<[1], [0], [0], [1], [0, 0, 1, 1], [], []>} : vector<2x32xf32>, vector<32x32xf32>, vector<2x32xf32> -> vector<2x32xf32>
    %c0_12 = arith.constant 0 : index
    %c0_13 = arith.constant 0 : index
    %14 = vector.load %arg5[%c0_12, %c0_13] : memref<1x32xf32, #tpu.memory_space<vmem>>, vector<1x32xf32>
    %15 = vector.broadcast %14 : vector<1x32xf32> to vector<2x32xf32>
    %16 = arith.addf %13, %15 : vector<2x32xf32>
    %cst_14 = arith.constant 0.353553385 : f32
    %17 = vector.broadcast %cst_14 : f32 to vector<2x32xf32>
    %18 = arith.mulf %16, %17 : vector<2x32xf32>
    %19 = vector.shape_cast %18 : vector<2x32xf32> to vector<2x1x32xf32>
    %20 = vector.shape_cast %3 : vector<4x32xf32> to vector<1x4x32xf32>
    %21 = vector.broadcast %19 : vector<2x1x32xf32> to vector<2x4x32xf32>
    %22 = vector.broadcast %20 : vector<1x4x32xf32> to vector<2x4x32xf32>
    %23 = arith.mulf %21, %22 : vector<2x4x32xf32>
    %24 = vector.shape_cast %23 : vector<2x4x32xf32> to vector<8x32xf32>
    %c0_15 = arith.constant 0 : index
    %c0_16 = arith.constant 0 : index
    %25 = vector.load %arg6[%c0_15, %c0_16] : memref<32x32xf32, #tpu.memory_space<vmem>>, vector<32x32xf32>
    %cst_17 = arith.constant dense<0.000000e+00> : vector<8x32xf32>
    %26 = tpu.matmul %24, %25, %cst_17 {dimension_numbers = #tpu.dot_dimension_numbers<[1], [0], [0], [1], [0, 0, 1, 1], [], []>} : vector<8x32xf32>, vector<32x32xf32>, vector<8x32xf32> -> vector<8x32xf32>
    %27 = vector.shape_cast %26 : vector<8x32xf32> to vector<2x4x32xf32>
    %c0_18 = arith.constant 0 : index
    %c0_19 = arith.constant 0 : index
    %28 = vector.load %arg7[%c0_18, %c0_19] : memref<1x32xf32, #tpu.memory_space<vmem>>, vector<1x32xf32>
    %29 = vector.broadcast %28 : vector<1x32xf32> to vector<2x32xf32>
    %30 = arith.mulf %18, %29 : vector<2x32xf32>
    %c0_20 = arith.constant 0 : index
    %c0_21 = arith.constant 0 : index
    %31 = vector.load %arg8[%c0_20, %c0_21] : memref<32x4xf32, #tpu.memory_space<vmem>>, vector<32x4xf32>
    %cst_22 = arith.constant dense<0.000000e+00> : vector<2x4xf32>
    %32 = tpu.matmul %30, %31, %cst_22 {dimension_numbers = #tpu.dot_dimension_numbers<[1], [0], [0], [1], [0, 0, 1, 1], [], []>} : vector<2x32xf32>, vector<32x4xf32>, vector<2x4xf32> -> vector<2x4xf32>
    "tpu.trace_start"() <{level = 10 : i32, message = "bhc,bct->bht"}> : () -> ()
    %cst_23 = arith.constant dense<0.000000e+00> : vector<2x4x64xf32>
    %33 = tpu.matmul %27, %6, %cst_23 {dimension_numbers = #tpu.dot_dimension_numbers<[2], [1], [1], [2], [0, 0, 0, 1, 1, 2], [0], [0]>} : vector<2x4x32xf32>, vector<2x32x64xf32>, vector<2x4x64xf32> -> vector<2x4x64xf32>
    "tpu.trace_stop"() : () -> ()
    %34 = vector.shape_cast %32 : vector<2x4xf32> to vector<2x4x1xf32>
    %35 = vector.broadcast %34 : vector<2x4x1xf32> to vector<2x4x64xf32>
    %36 = arith.addf %33, %35 : vector<2x4x64xf32>
    %37 = vector.shape_cast %11 : vector<2x32xf32> to vector<2x1x32xf32>
    %38 = vector.broadcast %37 : vector<2x1x32xf32> to vector<2x4x32xf32>
    %39 = arith.mulf %27, %38 : vector<2x4x32xf32>
    %cst_24 = arith.constant dense<0.000000e+00> : vector<2x4xf32>
    %40 = vector.multi_reduction <add>, %39, %cst_24 [2] : vector<2x4x32xf32> to vector<2x4xf32>
    %41 = arith.addf %40, %32 : vector<2x4xf32>
    %cst_25 = arith.constant dense<0xFF800000> : vector<2x4xf32>
    %42 = vector.multi_reduction <maximumf>, %36, %cst_25 [2] : vector<2x4x64xf32> to vector<2x4xf32>
    %43 = arith.maximumf %42, %41 : vector<2x4xf32>
    %44 = vector.shape_cast %43 : vector<2x4xf32> to vector<2x4x1xf32>
    %45 = vector.broadcast %44 : vector<2x4x1xf32> to vector<2x4x64xf32>
    %46 = arith.subf %36, %45 : vector<2x4x64xf32>
    %47 = math.exp %46 : vector<2x4x64xf32>
    %48 = arith.subf %41, %43 : vector<2x4xf32>
    %49 = math.exp %48 : vector<2x4xf32>
    %cst_26 = arith.constant dense<0.000000e+00> : vector<2x4xf32>
    %50 = vector.multi_reduction <add>, %47, %cst_26 [2] : vector<2x4x64xf32> to vector<2x4xf32>
    %51 = arith.addf %49, %50 : vector<2x4xf32>
    "tpu.trace_start"() <{level = 10 : i32, message = "bht,bct->bhc"}> : () -> ()
    %cst_27 = arith.constant dense<0.000000e+00> : vector<2x4x32xf32>
    %52 = tpu.matmul %47, %6, %cst_27 {dimension_numbers = #tpu.dot_dimension_numbers<[2], [2], [1], [1], [0, 0, 0, 1, 1, 1], [0], [0]>} : vector<2x4x64xf32>, vector<2x32x64xf32>, vector<2x4x32xf32> -> vector<2x4x32xf32>
    "tpu.trace_stop"() : () -> ()
    %53 = vector.shape_cast %49 : vector<2x4xf32> to vector<2x4x1xf32>
    %54 = vector.shape_cast %11 : vector<2x32xf32> to vector<2x1x32xf32>
    %55 = vector.broadcast %53 : vector<2x4x1xf32> to vector<2x4x32xf32>
    %56 = vector.broadcast %54 : vector<2x1x32xf32> to vector<2x4x32xf32>
    %57 = arith.mulf %55, %56 : vector<2x4x32xf32>
    %58 = arith.addf %52, %57 : vector<2x4x32xf32>
    %59 = vector.shape_cast %51 : vector<2x4xf32> to vector<2x4x1xf32>
    %60 = vector.broadcast %59 : vector<2x4x1xf32> to vector<2x4x32xf32>
    %61 = arith.divf %58, %60 : vector<2x4x32xf32>
    %62 = vector.shape_cast %61 : vector<2x4x32xf32> to vector<8x32xf32>
    %c0_28 = arith.constant 0 : index
    %c0_29 = arith.constant 0 : index
    %63 = vector.load %arg10[%c0_28, %c0_29] : memref<32x32xf32, #tpu.memory_space<vmem>>, vector<32x32xf32>
    %cst_30 = arith.constant dense<0.000000e+00> : vector<8x32xf32>
    %64 = tpu.matmul %62, %63, %cst_30 {dimension_numbers = #tpu.dot_dimension_numbers<[1], [0], [0], [1], [0, 0, 1, 1], [], []>} : vector<8x32xf32>, vector<32x32xf32>, vector<8x32xf32> -> vector<8x32xf32>
    %65 = vector.shape_cast %64 : vector<8x32xf32> to vector<2x4x32xf32>
    %66 = vector.shape_cast %3 : vector<4x32xf32> to vector<1x4x32xf32>
    %67 = vector.broadcast %66 : vector<1x4x32xf32> to vector<2x4x32xf32>
    %68 = arith.mulf %65, %67 : vector<2x4x32xf32>
    %cst_31 = arith.constant dense<0.000000e+00> : vector<2x32xf32>
    %69 = vector.multi_reduction <add>, %68, %cst_31 [1] : vector<2x4x32xf32> to vector<2x32xf32>
    %c0_32 = arith.constant 0 : index
    %c0_33 = arith.constant 0 : index
    %70 = vector.load %arg11[%c0_32, %c0_33] : memref<1x32xf32, #tpu.memory_space<vmem>>, vector<1x32xf32>
    %71 = vector.broadcast %70 : vector<1x32xf32> to vector<2x32xf32>
    %72 = arith.addf %69, %71 : vector<2x32xf32>
    %c0_34 = arith.constant 0 : index
    %c0_35 = arith.constant 0 : index
    %73 = vector.load %arg12[%c0_34, %c0_35] : memref<32x16xf32, #tpu.memory_space<vmem>>, vector<32x16xf32>
    %cst_36 = arith.constant dense<0.000000e+00> : vector<2x16xf32>
    %74 = tpu.matmul %72, %73, %cst_36 {dimension_numbers = #tpu.dot_dimension_numbers<[1], [0], [0], [1], [0, 0, 1, 1], [], []>} : vector<2x32xf32>, vector<32x16xf32>, vector<2x16xf32> -> vector<2x16xf32>
    %c0_37 = arith.constant 0 : index
    %c0_38 = arith.constant 0 : index
    %75 = vector.load %arg13[%c0_37, %c0_38] : memref<1x16xf32, #tpu.memory_space<vmem>>, vector<1x16xf32>
    %76 = vector.broadcast %75 : vector<1x16xf32> to vector<2x16xf32>
    %77 = arith.addf %74, %76 : vector<2x16xf32>
    %78 = vector.shape_cast %77 : vector<2x16xf32> to vector<2x1x16xf32>
    %c0_39 = arith.constant 0 : index
    %c0_40 = arith.constant 0 : index
    %c0_41 = arith.constant 0 : index
    %79 = vector.load %arg14[%c0_39, %c0_40, %c0_41] : memref<2x1x16xf32, #tpu.memory_space<vmem>>, vector<2x1x16xf32>
    tpu.vector_store %arg14[%c0_39, %c0_40, %c0_41], %78 {strides = array<i32>} : memref<2x1x16xf32, #tpu.memory_space<vmem>>, vector<2x1x16xf32>,
    return
  }
  func.func @transform_0(%arg0: i32) -> (i32, i32, i32) {
    %c0_i32 = arith.constant 0 : i32
    %c0_i32_0 = arith.constant 0 : i32
    %c0_i32_1 = arith.constant 0 : i32
    return %arg0, %c0_i32, %c0_i32_0 : i32, i32, i32
  }
  func.func @transform_1(%arg0: i32) -> (i32, i32) {
    %c0_i32 = arith.constant 0 : i32
    %c0_i32_0 = arith.constant 0 : i32
    %c0_i32_1 = arith.constant 0 : i32
    return %c0_i32, %c0_i32_0 : i32, i32
  }
  func.func @transform_2(%arg0: i32) -> (i32, i32) {
    %c0_i32 = arith.constant 0 : i32
    %c0_i32_0 = arith.constant 0 : i32
    %c0_i32_1 = arith.constant 0 : i32
    return %c0_i32, %c0_i32_0 : i32, i32
  }
  func.func @transform_3(%arg0: i32) -> (i32, i32) {
    %c0_i32 = arith.constant 0 : i32
    %c0_i32_0 = arith.constant 0 : i32
    %c0_i32_1 = arith.constant 0 : i32
    return %c0_i32, %c0_i32_0 : i32, i32
  }
  func.func @transform_4(%arg0: i32) -> (i32, i32) {
    %c0_i32 = arith.constant 0 : i32
    %c0_i32_0 = arith.constant 0 : i32
    %c0_i32_1 = arith.constant 0 : i32
    return %c0_i32, %c0_i32_0 : i32, i32
  }
  func.func @transform_5(%arg0: i32) -> (i32, i32) {
    %c0_i32 = arith.constant 0 : i32
    %c0_i32_0 = arith.constant 0 : i32
    %c0_i32_1 = arith.constant 0 : i32
    return %c0_i32, %c0_i32_0 : i32, i32
  }
  func.func @transform_6(%arg0: i32) -> (i32, i32) {
    %c0_i32 = arith.constant 0 : i32
    %c0_i32_0 = arith.constant 0 : i32
    %c0_i32_1 = arith.constant 0 : i32
    return %c0_i32, %c0_i32_0 : i32, i32
  }
  func.func @transform_7(%arg0: i32) -> (i32, i32) {
    %c0_i32 = arith.constant 0 : i32
    %c0_i32_0 = arith.constant 0 : i32
    %c0_i32_1 = arith.constant 0 : i32
    return %c0_i32, %c0_i32_0 : i32, i32
  }
  func.func @transform_8(%arg0: i32) -> (i32, i32) {
    %c0_i32 = arith.constant 0 : i32
    %c0_i32_0 = arith.constant 0 : i32
    %c0_i32_1 = arith.constant 0 : i32
    return %c0_i32, %c0_i32_0 : i32, i32
  }
  func.func @transform_9(%arg0: i32) -> (i32, i32) {
    %c0_i32 = arith.constant 0 : i32
    %c0_i32_0 = arith.constant 0 : i32
    %c0_i32_1 = arith.constant 0 : i32
    return %c0_i32, %c0_i32_0 : i32, i32
  }
  func.func @transform_10(%arg0: i32) -> (i32, i32) {
    %c0_i32 = arith.constant 0 : i32
    %c0_i32_0 = arith.constant 0 : i32
    %c0_i32_1 = arith.constant 0 : i32
    return %c0_i32, %c0_i32_0 : i32, i32
  }
  func.func @transform_11(%arg0: i32) -> (i32, i32) {
    %c0_i32 = arith.constant 0 : i32
    %c0_i32_0 = arith.constant 0 : i32
    %c0_i32_1 = arith.constant 0 : i32
    return %c0_i32, %c0_i32_0 : i32, i32
  }
  func.func @transform_12(%arg0: i32) -> (i32, i32) {
    %c0_i32 = arith.constant 0 : i32
    %c0_i32_0 = arith.constant 0 : i32
    %c0_i32_1 = arith.constant 0 : i32
    return %c0_i32, %c0_i32_0 : i32, i32
  }
  func.func @transform_13(%arg0: i32) -> (i32, i32, i32) {
    %c0_i32 = arith.constant 0 : i32
    %c0_i32_0 = arith.constant 0 : i32
    %c0_i32_1 = arith.constant 0 : i32
    return %arg0, %c0_i32, %c0_i32_0 : i32, i32, i32
  }
}

</mosaic_0001>

<bundles_post_ra>
// kernel: tpu_custom_call.1
= control target key start
LH: loop header
LB: loop body
LE: loop exit
PB: predicated region body
PF: predicated region fallthrough
CT: control target
= control target key end

     0   :  { %18 = vsyncpa [#allocation3], 0  ;;  %s2335_s0 = inlined_call_operand.vmem [shape: f32[2,32,64], index: 0, kind: input, shape index: {}]   ;;  %s2336_s1 = inlined_call_operand.vmem [shape: f32[1,32], index: 1, kind: input, shape index: {}]   ;;  %s2337_s2 = inlined_call_operand.hbm [shape: f32[32,64], index: 2, kind: input, shape index: {}]   ;;  %s2338_s3 = inlined_call_operand.hbm [shape: f32[32,32], index: 3, kind: input, shape index: {}]   ;;  %s2339_s4 = inlined_call_operand.vmem [shape: f32[1,32], index: 4, kind: input, shape index: {}]   ;;  %s2340_s5 = inlined_call_operand.vmem [shape: f32[32,32], index: 5, kind: input, shape index: {}]   ;;  %s2341_s6 = inlined_call_operand.hbm [shape: f32[1,32], index: 6, kind: input, shape index: {}]   ;;  %s2342_s7 = inlined_call_operand.vmem [shape: f32[32,4], index: 7, kind: input, shape index: {}]   ;;  %s2343_s8 = inlined_call_operand.hbm [shape: f32[4,32], index: 8, kind: input, shape index: {}]   ;;  %s2344_s9 = inlined_call_operand.hbm [shape: f32[32,32], index: 9, kind: input, shape index: {}]   ;;  %s2345_s10 = inlined_call_operand.vmem [shape: f32[1,32], index: 10, kind: input, shape index: {}]   ;;  %s2346_s11 = inlined_call_operand.vmem [shape: f32[32,16], index: 11, kind: input, shape index: {}]   ;;  %s2347_s12 = inlined_call_operand.vmem [shape: f32[1,16], index: 12, kind: input, shape index: {}]   ;;  %s2348_s13 = inlined_call_operand.hbm [shape: f32[2,1,16], index: 13, kind: output, shape index: {}]  }
   0x1   :  { %19 = vsyncpa [#allocation6], 0 }
   0x2   :  { %20 = vsyncpa [#allocation9], 0 }
   0x3   :  { %21 = vsyncpa [#allocation4], 0  ;;  %s1899_s25 = smov [#allocation5]   ;;  %s1900_s27 = smov [#allocation8]  }
   0x4   :  { %s43_s26 = sshll.u32 %s1899_s25, 4  ;;  %s72_s28 = sshll.u32 %s1900_s27, 4  ;;  %s44_s26 = int_to_ptr.vmem [resolvable:$true] %s43_s26  ;;  %s73_s28 = int_to_ptr.vmem [resolvable:$true] %s72_s28 }
   0x5   :  { %s1759_s14 = scalar_lea.hbm %s2338_s3, 512 }
   0x6   :  { %p1760_p0 = scmp.ne.s32.totalorder %s2338_s3, %s1759_s14  ;;  %p1763_p1 = scmp.lt.u32.totalorder %s1759_s14, %s2338_s3 }
   0x8   :  { %p1765_p2 = pnand %p1763_p1, %p1760_p0 }
   0xa   :  { %1768 = shalt.err (!%p1765_p2)
}
   0xb   :  { %s1769_s19 = scalar_lea.vmem %s44_s26, 512  ;;  %p1774_p4 = scmp.lt.s32.totalorder %s44_s26, %s44_s26 }
   0xc   :  { %p1770_p3 = scmp.ne.s32.totalorder %s44_s26, %s1769_s19  ;;  %p1775_p5 = scmp.lt.s32.totalorder %s1769_s19, %s1769_s19 }
   0xe   :  { %p1776_p6 = por %p1775_p5, %p1774_p4 }
  0x10   :  { %p1777_p7 = pnand %p1776_p6, %p1770_p3 }
  0x12   :  { %1780 = shalt.err (!%p1777_p7)
}
  0x13   :  { %s1901_s20 = smov 128   ;;  %s1902_s21 = smov 8  }
  0x14   :  { %49 = dma.hbm_to_vmem [thread:$0]  %s2338_s3, 512, %s44_s26, [#allocation6], %s1901_s20, %s1901_s20, %s1902_s21  }
  0x15   :  { %s1781_s27 = scalar_lea.hbm %s2343_s8, 64 }
  0x16   :  { %p1782_p8 = scmp.ne.s32.totalorder %s2343_s8, %s1781_s27  ;;  %p1785_p9 = scmp.lt.u32.totalorder %s1781_s27, %s2343_s8 }
  0x18   :  { %p1787_p10 = pnand %p1785_p9, %p1782_p8 }
  0x1a   :  { %1790 = shalt.err (!%p1787_p10)
}
  0x1b   :  { %s1791_s16 = scalar_lea.vmem %s73_s28, 64  ;;  %p1796_p12 = scmp.lt.s32.totalorder %s73_s28, %s73_s28 }
  0x1c   :  { %p1792_p11 = scmp.ne.s32.totalorder %s73_s28, %s1791_s16  ;;  %p1797_p13 = scmp.lt.s32.totalorder %s1791_s16, %s1791_s16 }
  0x1e   :  { %p1798_p0 = por %p1797_p13, %p1796_p12 }
  0x20   :  { %p1799_p1 = pnand %p1798_p0, %p1792_p11 }
  0x22   :  { %1802 = shalt.err (!%p1799_p1)
}
  0x23   :  { %75 = dma.hbm_to_vmem [thread:$0]  %s2343_s8, 64, %s73_s28, [#allocation9]  }
  0x24   :  { %s1903_s17 = smov [#allocation2]   ;;  %s1904_s19 = smov [#allocation7]  }
  0x25   :  { %s31_s18 = sshll.u32 %s1903_s17, 4  ;;  %s60_s22 = sshll.u32 %s1904_s19, 4  ;;  %s32_s18 = int_to_ptr.vmem [resolvable:$true] %s31_s18  ;;  %s61_s22 = int_to_ptr.vmem [resolvable:$true] %s60_s22 }
  0x26   :  { %s1803_s25 = scalar_lea.hbm %s2337_s2, 512 }
  0x27   :  { %p1804_p2 = scmp.ne.s32.totalorder %s2337_s2, %s1803_s25  ;;  %p1807_p3 = scmp.lt.u32.totalorder %s1803_s25, %s2337_s2 }
  0x29   :  { %p1809_p4 = pnand %p1807_p3, %p1804_p2 }
  0x2b   :  { %1812 = shalt.err (!%p1809_p4)
}
  0x2c   :  { %s1813_s8 = scalar_lea.vmem %s32_s18, 512  ;;  %p1818_p6 = scmp.lt.s32.totalorder %s32_s18, %s32_s18 }
  0x2d   :  { %p1814_p5 = scmp.ne.s32.totalorder %s32_s18, %s1813_s8  ;;  %p1819_p7 = scmp.lt.s32.totalorder %s1813_s8, %s1813_s8 }
  0x2f   :  { %p1820_p8 = por %p1819_p7, %p1818_p6 }
  0x31   :  { %p1821_p9 = pnand %p1820_p8, %p1814_p5 }
  0x33   :  { %1824 = shalt.err (!%p1821_p9)
}
  0x34   :  { %37 = dma.hbm_to_vmem [thread:$0]  %s2337_s2, 512, %s32_s18, [#allocation3], %s1901_s20, %s1901_s20, %s1902_s21  }
  0x35   :  { %s1825_s26 = scalar_lea.hbm %s2341_s6, 16 }
  0x36   :  { %p1826_p10 = scmp.ne.s32.totalorder %s2341_s6, %s1825_s26  ;;  %p1829_p11 = scmp.lt.u32.totalorder %s1825_s26, %s2341_s6 }
  0x38   :  { %p1831_p12 = pnand %p1829_p11, %p1826_p10 }
  0x3a   :  { %1834 = shalt.err (!%p1831_p12)
}
  0x3b   :  { %s1835_s25 = scalar_lea.vmem %s61_s22, 16  ;;  %s1839_s27 = scalar_lea.vmem %s61_s22, 32 }
  0x3c   :  { %p1836_p13 = scmp.ne.s32.totalorder %s61_s22, %s1835_s25  ;;  %p1840_p0 = scmp.lt.s32.totalorder %s61_s22, %s61_s22 }
  0x3d   :  { %p1841_p1 = scmp.lt.s32.totalorder %s1839_s27, %s1835_s25 }
  0x3f   :  { %p1842_p2 = por %p1841_p1, %p1840_p0 }
  0x41   :  { %p1843_p3 = pnand %p1842_p2, %p1836_p13 }
  0x43   :  { %1846 = shalt.err (!%p1843_p3)
}
  0x44   :  { %63 = dma.hbm_to_vmem [thread:$0]  %s2341_s6, 16, %s61_s22, [#allocation6]  }
  0x45   :  { %s1905_s29 = smov [#allocation10]   ;;  %s1847_s28 = scalar_lea.hbm %s2344_s9, 512 }
  0x46   :  { %s81_s30 = sshll.u32 %s1905_s29, 4  ;;  %p1848_p4 = scmp.ne.s32.totalorder %s2344_s9, %s1847_s28  ;;  %s82_s30 = int_to_ptr.vmem [resolvable:$true] %s81_s30 }
  0x47   :  { %p1851_p5 = scmp.lt.u32.totalorder %s1847_s28, %s2344_s9 }
  0x49   :  { %p1853_p6 = pnand %p1851_p5, %p1848_p4 }
  0x4b   :  { %1856 = shalt.err (!%p1853_p6)
}
  0x4c   :  { %s1857_s17 = scalar_lea.vmem %s82_s30, 512  ;;  %p1862_p8 = scmp.lt.s32.totalorder %s82_s30, %s82_s30 }
  0x4d   :  { %p1858_p7 = scmp.ne.s32.totalorder %s82_s30, %s1857_s17  ;;  %p1863_p9 = scmp.lt.s32.totalorder %s1857_s17, %s1857_s17 }
  0x4f   :  { %p1864_p10 = por %p1863_p9, %p1862_p8 }
  0x51   :  { %p1865_p11 = pnand %p1864_p10, %p1858_p7 }
  0x53   :  { %1868 = shalt.err (!%p1865_p11)
}
  0x54   :  { %87 = dma.hbm_to_vmem [thread:$0]  %s2344_s9, 512, %s82_s30, [#allocation9], %s1901_s20, %s1901_s20, %s1902_s21  }
  0x55   :  { %1891 = dma.done.wait [#allocation3], 512  }
  0x56   :  { %1892 = vsyncadd [#allocation3], 4294966784 }
  0x57   :  { %1893 = dma.done.wait [#allocation6], 528  }
  0x58   :  { %1894 = vsyncadd [#allocation6], 4294966768 }
  0x59   :  { %1895 = dma.done.wait [#allocation9], 576  }
  0x5a   :  { %1896 = vsyncadd [#allocation9], 4294966720  ;;  %vm131_vm0 = vcmask 523264   ;;  %v113_v0 = vld [vmem:[%s2335_s0 + $0x20] sm:$0xff]  ;;  %v114_v7 = vld [vmem:[%s2335_s0 + $0x28] sm:$0xff]  ;;  %v1906_v33 = vmov 0  }
  0x5b   :  { %v117_v1 = vld [vmem:[#allocation2] sm:$0xff]  ;;  %v144_v3 = vsel %vm131_vm0, %v113_v0, 0.0  ;;  %v118_v8 = vld [vmem:[#allocation2 + $0x8] sm:$0xff]  ;;  %v115_v12 = vld [vmem:[%s2335_s0 + $0x30] sm:$0xff]  ;;  %v147_v15 = vsel %vm131_vm0, %v114_v7, 0.0  ;;  %1746 = vset.pattern.permute.xlu1 %v1906_v33  ;;  %1745 = vset.pattern.permute.xlu0 %v1906_v33  ;;  %v1907_v63 = vmov 0.0|0.0  }
  0x5c   :  { %v109_v2 = vld [vmem:[%s2335_s0] sm:$0xff]  ;;  %v127_v4 = vadd.f32 %v117_v1, %v113_v0  ;;  %v110_v9 = vld [vmem:[%s2335_s0 + $0x8] sm:$0xff]  ;;  %145 = vadd.xlane.f32.xlu1 %v144_v3  ;;  %v128_v10 = vadd.f32 %v118_v8, %v114_v7  ;;  %v119_v13 = vld [vmem:[#allocation2 + $0x10] sm:$0xff]  ;;  %v150_v27 = vsel %vm131_vm0, %v115_v12, 0.0  ;;  %1672 = vmatprep.subr.bf16.mxu0 %v1907_v63  ;;  %vm1908_vm1 = vmmov 0   ;;  %s1911_s26 = smov [#allocation11]  }
  0x5d   :  { %v132_v5 = vsel %vm131_vm0, %v109_v2, 0.0  ;;  %v123_v6 = vadd.f32 %v117_v1, %v109_v2  ;;  %v124_v11 = vadd.f32 %v118_v8, %v110_v9  ;;  %v111_v14 = vld [vmem:[%s2335_s0 + $0x10] sm:$0xff]  ;;  %v135_v16 = vsel %vm131_vm0, %v110_v9, 0.0  ;;  %v116_v19 = vld [vmem:[%s2335_s0 + $0x38] sm:$0xff]  ;;  %v1506_v32 = vld [vmem:[%s2336_s1] ss:$0 sm:$0xff]  ;;  %1678 = vmatprep.subr.bf16.mxu1 %v1907_v63 }
  0x5e   :  { %133 = vadd.xlane.f32.xlu0 %v132_v5  ;;  %v129_v17 = vadd.f32 %v119_v13, %v115_v12  ;;  %v125_v18 = vadd.f32 %v119_v13, %v111_v14  ;;  %v120_v20 = vld [vmem:[#allocation2 + $0x18] sm:$0xff]  ;;  %v2078_v21 = vpack.c.bf16 %v128_v10, %v127_v4  ;;  %v138_v28 = vsel %vm131_vm0, %v111_v14, 0.0  ;;  %v197_v58 = vld [vmem:[#allocation5] sm:$0xff]  ;;  %v198_v59 = vld [vmem:[#allocation5 + $0x8] sm:$0xff]  ;;  %s1492_s17 = sshll.u32 %s1911_s26, 4  ;;  %s1493_s17 = int_to_ptr.vmem [resolvable:$true] %s1492_s17 }
  0x5f   :  { %v2080_v22 = vpack.c.bf16 %v124_v11, %v123_v6  ;;  %v130_v23 = vadd.f32 %v120_v20, %v116_v19  ;;  %v112_v24 = vld [vmem:[%s2335_s0 + $0x18] sm:$0xff]  ;;  %v153_v30 = vsel %vm131_vm0, %v116_v19, 0.0  ;;  %v1673_v61 = vpack.c.bf16 %v198_v59, %v197_v58  ;;  %v199_v4 = vld [vmem:[#allocation5 + $0x10] sm:$0xff]  ;;  %vm1704_vm11 = vmpackc.low %vm131_vm0, %vm131_vm0  ;;  %p1874_p13 = scmp.lt.s32.totalorder %s1493_s17, %s1493_s17 }
  0x60   :  { %v126_v25 = vadd.f32 %v120_v20, %v112_v24  ;;  %148 = vadd.xlane.f32.xlu1 %v147_v15  ;;  %v141_v31 = vsel %vm131_vm0, %v112_v24, 0.0  ;;  %v200_v5 = vld [vmem:[#allocation5 + $0x18] sm:$0xff]  ;;  %v1909_v9 = vmov 0.0   ;;  %v240_v24 = vlaneseq }
  0x61   :  { %v2085_v26 = vpack.c.bf16 %v130_v23, %v129_v17  ;;  %1674 = vmatpush3.bf16.msra.mxu0 %v1673_v61  ;;  %v1676_v6 = vpack.c.bf16 %v200_v5, %v199_v4  ;;  %1581 = vmatprep.mubr.msk.f32.mxu0 %vm1908_vm1, %v1909_v9  ;;  %vm251_vm2 = vcmask 130112   ;;  %vm258_vm3 = vcmask 195712  }
  0x62   :  { %136 = vadd.xlane.f32.xlu0 %v135_v16  ;;  %v2089_v29 = vpack.c.bf16 %v126_v25, %v125_v18  ;;  %1675 = vmatprep.subr.bf16.mxu0 %v1907_v63  ;;  %v241_v25 = vand.u32 127, %v240_v24  ;;  %vm265_vm4 = vcmask 261312   ;;  %vm286_vm5 = vcmask 1041409  }
  0x63   :  { %1592 = vmatprep.mubr.msk.f32.mxu1 %vm1908_vm1, %v1909_v9  ;;  %vm288_vm6 = vcmask 261120   ;;  %vm987_vm7 = vcmask 1042434   ;;  %vm989_vm8 = vcmask 1043459   ;;  %vm998_vm9 = vcmask 257024  }
  0x64   :  { %151 = vadd.xlane.f32.xlu1 %v150_v27  ;;  %vm1024_vm10 = vcmask 519168   ;;  %vm1484_vm12 = vcmask 122880  }
  0x65   :  { %1677 = vmatpush3.bf16.msra.mxu0 %v1676_v6 }
  0x66   :  { %139 = vadd.xlane.f32.xlu0 %v138_v28  ;;  %1684 = vmatprep.subr.bf16.mxu0 %v1907_v63  ;;  %v2104_v28 = vshrl.u32 %v240_v24, 7 }
  0x68   :  { %154 = vadd.xlane.f32.xlu1 %v153_v30  ;;  %v246_v30 = vadd.s32 4294967288, %v241_v25 }
  0x6a   :  { %142 = vadd.xlane.f32.xlu0 %v141_v31 }
  0x79   :  { %175 = vbcast.lane.b32.xlu1 %v1506_v32, 264 }
  0x7d   :  { %179 = vbcast.lane.b32.xlu1 %v1506_v32, 272 }
  0x80   :  { %171 = vbcast.lane.b32.xlu0 %v1506_v32, 256 }
  0x81   :  { %183 = vbcast.lane.b32.xlu1 %v1506_v32, 280  ;;  %v253_v32 = vadd.s32 4294967280, %v241_v25 }
  0xe9   :  { %v146_v34 = vpop.xlane.xlu1 %145 }
  0xea   :  { %v161_v48 = vmul.f32 0.015625, %v146_v34  ;;  %v2107_v34 = vsub.s32 %v246_v30, %v2104_v28 }
  0xeb   :  { %v134_v35 = vpop.xlane.xlu0 %133 }
  0xec   :  { %v157_v42 = vmul.f32 0.015625, %v134_v35  ;;  %v2110_v35 = vsub.s32 %v241_v25, %v2104_v28 }
  0xed   :  { %v149_v36 = vpop.xlane.xlu1 %148 }
  0xee   :  { %v162_v49 = vmul.f32 0.015625, %v149_v36 }
  0xef   :  { %v137_v37 = vpop.xlane.xlu0 %136 }
  0xf0   :  { %v158_v43 = vmul.f32 0.015625, %v137_v37  ;;  %v260_v37 = vadd.s32 4294967272, %v241_v25 }
  0xf1   :  { %v152_v38 = vpop.xlane.xlu1 %151 }
  0xf2   :  { %v163_v54 = vmul.f32 0.015625, %v152_v38  ;;  %v2113_v38 = vsub.s32 %v253_v32, %v2104_v28 }
  0xf3   :  { %v140_v39 = vpop.xlane.xlu0 %139 }
  0xf4   :  { %v159_v53 = vmul.f32 0.015625, %v140_v39 }
  0xf5   :  { %v155_v40 = vpop.xlane.xlu1 %154 }
  0xf6   :  { %v164_v62 = vmul.f32 0.015625, %v155_v40 }
  0xf7   :  { %v143_v41 = vpop.xlane.xlu0 %142 }
  0xf8   :  { %v160_v60 = vmul.f32 0.015625, %v143_v41 }
  0xf9   :  { %v176_v44 = vpop.permute.xlu1 %175 }
  0xfa   :  { %v190_v46 = vadd.f32 %v176_v44, %v158_v43  ;;  %v194_v52 = vadd.f32 %v176_v44, %v162_v49  ;;  %v2118_v43 = vsub.s32 %v260_v37, %v2104_v28 }
  0xfb   :  { %v172_v45 = vpop.permute.xlu0 %171 }
  0xfc   :  { %v189_v47 = vadd.f32 %v172_v45, %v157_v42  ;;  %220 = vperm.xlu1 %1746, %v190_v46   ;;  %v193_v51 = vadd.f32 %v172_v45, %v161_v48  ;;  %v723_v2 = vcombine.high %v190_v46, %v190_v46  ;;  %v727_v11 = vcombine.high %v194_v52, %v194_v52 }
  0xfd   :  { %v180_v50 = vpop.permute.xlu1 %179 }
  0xfe   :  { %217 = vperm.xlu0 %1745, %v189_v47   ;;  %v191_v55 = vadd.f32 %v180_v50, %v159_v53  ;;  %v195_v56 = vadd.f32 %v180_v50, %v163_v54  ;;  %v722_v0 = vcombine.high %v189_v47, %v189_v47  ;;  %v731_v8 = vcombine.low %v190_v46, %v723_v2 }
  0xff   :  { %v726_v10 = vcombine.high %v193_v51, %v193_v51  ;;  %v735_v13 = vcombine.low %v194_v52, %v727_v11 }
 0x100   :  { %229 = vperm.xlu1 %1746, %v193_v51   ;;  %v730_v7 = vcombine.low %v189_v47, %v722_v0  ;;  %v724_v14 = vcombine.high %v191_v55, %v191_v55  ;;  %v728_v16 = vcombine.high %v195_v56, %v195_v56 }
 0x101   :  { %v184_v57 = vpop.permute.xlu1 %183  ;;  %v734_v12 = vcombine.low %v193_v51, %v726_v10 }
 0x102   :  { %232 = vperm.xlu0 %1745, %v194_v52   ;;  %v192_v1 = vadd.f32 %v184_v57, %v160_v60  ;;  %v196_v3 = vadd.f32 %v184_v57, %v164_v62  ;;  %v732_v15 = vcombine.low %v191_v55, %v724_v14  ;;  %v736_v17 = vcombine.low %v195_v56, %v728_v16 }
 0x104   :  { %223 = vperm.xlu1 %1746, %v191_v55   ;;  %v725_v18 = vcombine.high %v192_v1, %v192_v1  ;;  %v729_v20 = vcombine.high %v196_v3, %v196_v3 }
 0x106   :  { %235 = vperm.xlu0 %1745, %v195_v56   ;;  %v733_v19 = vcombine.low %v192_v1, %v725_v18  ;;  %v737_v23 = vcombine.low %v196_v3, %v729_v20 }
 0x108   :  { %226 = vperm.xlu1 %1746, %v192_v1  }
 0x10a   :  { %238 = vperm.xlu0 %1745, %v196_v3  }
 0x10c   :  { %739 = vperm.xlu1 %1746, %v730_v7  }
 0x10e   :  { %742 = vperm.xlu0 %1745, %v731_v8  }
 0x110   :  { %751 = vperm.xlu1 %1746, %v730_v7  }
 0x112   :  { %754 = vperm.xlu0 %1745, %v731_v8  }
 0x114   :  { %787 = vperm.xlu1 %1746, %v734_v12  }
 0x116   :  { %790 = vperm.xlu0 %1745, %v735_v13  }
 0x118   :  { %799 = vperm.xlu1 %1746, %v734_v12  }
 0x11a   :  { %802 = vperm.xlu0 %1745, %v735_v13  }
 0x11c   :  { %745 = vperm.xlu1 %1746, %v732_v15  }
 0x11e   :  { %757 = vperm.xlu0 %1745, %v732_v15  }
 0x120   :  { %763 = vperm.xlu1 %1746, %v730_v7  }
 0x122   :  { %766 = vperm.xlu0 %1745, %v731_v8  }
 0x124   :  { %793 = vperm.xlu1 %1746, %v736_v17  }
 0x126   :  { %805 = vperm.xlu0 %1745, %v736_v17  }
 0x128   :  { %811 = vperm.xlu1 %1746, %v734_v12  }
 0x12a   :  { %814 = vperm.xlu0 %1745, %v735_v13  }
 0x12c   :  { %748 = vperm.xlu1 %1746, %v733_v19  }
 0x12e   :  { %760 = vperm.xlu0 %1745, %v733_v19  }
 0x130   :  { %769 = vperm.xlu1 %1746, %v732_v15  }
 0x132   :  { %775 = vperm.xlu0 %1745, %v730_v7  }
 0x134   :  { %778 = vperm.xlu1 %1746, %v731_v8  }
 0x136   :  { %796 = vperm.xlu0 %1745, %v737_v23  }
 0x138   :  { %808 = vperm.xlu1 %1746, %v737_v23  }
 0x13a   :  { %817 = vperm.xlu0 %1745, %v736_v17  }
 0x13c   :  { %823 = vperm.xlu1 %1746, %v734_v12  }
 0x13e   :  { %826 = vperm.xlu0 %1745, %v735_v13  }
 0x140   :  { %772 = vperm.xlu1 %1746, %v733_v19  }
 0x142   :  { %781 = vperm.xlu0 %1745, %v732_v15  }
 0x144   :  { %820 = vperm.xlu1 %1746, %v737_v23  }
 0x146   :  { %829 = vperm.xlu0 %1745, %v736_v17  }
 0x148   :  { %784 = vperm.xlu1 %1746, %v733_v19  }
 0x14a   :  { %832 = vperm.xlu0 %1745, %v737_v23  }
 0x17b   :  { %v221_v27 = vpop.permute.xlu1 %220 }
 0x17c   :  { %v250_v40 = vrot.slane %v221_v27, %v2107_v34 }
 0x17d   :  { %v218_v31 = vpop.permute.xlu0 %217 }
 0x17e   :  { %v245_v41 = vrot.slane %v218_v31, %v2110_v35 }
 0x17f   :  { %v230_v33 = vpop.permute.xlu1 %229 }
 0x180   :  { %v270_v44 = vrot.slane %v230_v33, %v2110_v35  ;;  %v252_v49 = vsel %vm251_vm2, %v250_v40, %v245_v41 }
 0x181   :  { %v233_v36 = vpop.permute.xlu0 %232 }
 0x182   :  { %v274_v45 = vrot.slane %v233_v36, %v2107_v34 }
 0x183   :  { %v224_v39 = vpop.permute.xlu1 %223 }
 0x184   :  { %v257_v46 = vrot.slane %v224_v39, %v2113_v38  ;;  %v275_v52 = vsel %vm251_vm2, %v274_v45, %v270_v44 }
 0x185   :  { %v236_v42 = vpop.permute.xlu0 %235 }
 0x186   :  { %v279_v47 = vrot.slane %v236_v42, %v2113_v38  ;;  %v259_v53 = vsel %vm258_vm3, %v257_v46, %v252_v49 }
 0x187   :  { %v227_v48 = vpop.permute.xlu1 %226 }
 0x188   :  { %v264_v50 = vrot.slane %v227_v48, %v2118_v43  ;;  %v280_v55 = vsel %vm258_vm3, %v279_v47, %v275_v52 }
 0x189   :  { %v239_v51 = vpop.permute.xlu0 %238 }
 0x18a   :  { %v284_v54 = vrot.slane %v239_v51, %v2118_v43  ;;  %v2131_v56 = vsel %vm265_vm4, %v264_v50, %v259_v53 }
 0x18b   :  { %v740_v58 = vpop.permute.xlu1 %739 }
 0x18c   :  { %v2134_v57 = vsel %vm265_vm4, %v284_v54, %v280_v55  ;;  %v837_v60 = vrot.slane %v740_v58, %v2110_v35 }
 0x18d   :  { %v743_v59 = vpop.permute.xlu0 %742  ;;  %v287_v61 = vsel %vm286_vm5, %v2134_v57, %v2131_v56 }
 0x18e   :  { %v841_v62 = vrot.slane %v743_v59, %v2107_v34  ;;  %1582 = vmatmul.mubr.msk.f32.vlgmr.msra.gmra.mrb[0].mxu0 %vm288_vm6, %v287_v61 }
 0x18f   :  { %1603 = vmatprep.mubr.msk.f32.mxu0 %vm1908_vm1, %v1909_v9  ;;  %v752_v1 = vpop.permute.xlu1 %751 }
 0x190   :  { %v842_v0 = vsel %vm251_vm2, %v841_v62, %v837_v60  ;;  %v856_v3 = vrot.slane %v752_v1, %v2110_v35 }
 0x191   :  { %v755_v2 = vpop.permute.xlu0 %754 }
 0x192   :  { %v860_v4 = vrot.slane %v755_v2, %v2107_v34 }
 0x193   :  { %v788_v6 = vpop.permute.xlu1 %787 }
 0x194   :  { %v861_v5 = vsel %vm251_vm2, %v860_v4, %v856_v3  ;;  %v913_v8 = vrot.slane %v788_v6, %v2110_v35 }
 0x195   :  { %v791_v7 = vpop.permute.xlu0 %790 }
 0x196   :  { %v917_v10 = vrot.slane %v791_v7, %v2107_v34 }
 0x197   :  { %v800_v12 = vpop.permute.xlu1 %799 }
 0x198   :  { %v918_v11 = vsel %vm251_vm2, %v917_v10, %v913_v8  ;;  %v932_v14 = vrot.slane %v800_v12, %v2110_v35 }
 0x199   :  { %v803_v13 = vpop.permute.xlu0 %802 }
 0x19a   :  { %v936_v15 = vrot.slane %v803_v13, %v2107_v34 }
 0x19b   :  { %v746_v17 = vpop.permute.xlu1 %745 }
 0x19c   :  { %v937_v16 = vsel %vm251_vm2, %v936_v15, %v932_v14  ;;  %v846_v36 = vrot.slane %v746_v17, %v2113_v38 }
 0x19d   :  { %v758_v18 = vpop.permute.xlu0 %757 }
 0x19e   :  { %v865_v39 = vrot.slane %v758_v18, %v2113_v38  ;;  %v847_v45 = vsel %vm258_vm3, %v846_v36, %v842_v0 }
 0x19f   :  { %v764_v19 = vpop.permute.xlu1 %763 }
 0x1a0   :  { %v875_v23 = vrot.slane %v764_v19, %v2110_v35  ;;  %v866_v47 = vsel %vm258_vm3, %v865_v39, %v861_v5 }
 0x1a1   :  { %v767_v20 = vpop.permute.xlu0 %766 }
 0x1a2   :  { %v879_v24 = vrot.slane %v767_v20, %v2107_v34 }
 0x1a3   :  { %v794_v27 = vpop.permute.xlu1 %793 }
 0x1a4   :  { %v880_v25 = vsel %vm251_vm2, %v879_v24, %v875_v23  ;;  %v922_v60 = vrot.slane %v794_v27, %v2113_v38 }
 0x1a5   :  { %v806_v30 = vpop.permute.xlu0 %805 }
 0x1a6   :  { %v941_v59 = vrot.slane %v806_v30, %v2113_v38  ;;  %v923_v4 = vsel %vm258_vm3, %v922_v60, %v918_v11 }
 0x1a7   :  { %v812_v31 = vpop.permute.xlu1 %811 }
 0x1a8   :  { %v951_v33 = vrot.slane %v812_v31, %v2110_v35  ;;  %v942_v3 = vsel %vm258_vm3, %v941_v59, %v937_v16  ;;  %v1910_v59 = vmov 1966171168  }
 0x1a9   :  { %v815_v32 = vpop.permute.xlu0 %814  ;;  %v364_v60 = vunpack.c.l.s4 %v1910_v59 }
 0x1aa   :  { %v955_v37 = vrot.slane %v815_v32, %v2107_v34 }
 0x1ab   :  { %v749_v41 = vpop.permute.xlu1 %748 }
 0x1ac   :  { %v956_v40 = vsel %vm251_vm2, %v955_v37, %v951_v33  ;;  %v851_v44 = vrot.slane %v749_v41, %v2118_v43 }
 0x1ad   :  { %v761_v42 = vpop.permute.xlu0 %760 }
 0x1ae   :  { %v870_v46 = vrot.slane %v761_v42, %v2118_v43  ;;  %v852_v48 = vsel %vm265_vm4, %v851_v44, %v847_v45 }
 0x1af   :  { %v770_v50 = vpop.permute.xlu1 %769 }
 0x1b0   :  { %v871_v49 = vsel %vm265_vm4, %v870_v46, %v866_v47  ;;  %v884_v13 = vrot.slane %v770_v50, %v2113_v38  ;;  %v487_v46 = vld [vmem:[%s2342_s7] sm:$0xff]  ;;  %v488_v47 = vld [vmem:[%s2342_s7 + $0x8] sm:$0xff] }
 0x1b1   :  { %v986_v51 = vsel %vm286_vm5, %v871_v49, %v852_v48  ;;  %v776_v52 = vpop.permute.xlu0 %775  ;;  %v1685_v48 = vpack.c.bf16 %v488_v47, %v487_v46  ;;  %v490_v49 = vld [vmem:[%s2342_s7 + $0x18] sm:$0xff] }
 0x1b2   :  { %v894_v54 = vrot.slane %v776_v52, %v2110_v35  ;;  %v885_v18 = vsel %vm258_vm3, %v884_v13, %v880_v25  ;;  %v398_v52 = vld [vmem:[%s2340_s5 + $0x8] sm:$0xff] }
 0x1b3   :  { %v779_v53 = vpop.permute.xlu1 %778  ;;  %1686 = vmatpush3.bf16.msra.mxu0 %v1685_v48 }
 0x1b4   :  { %v898_v58 = vrot.slane %v779_v53, %v2107_v34  ;;  %1687 = vmatprep.subr.bf16.mxu0 %v1907_v63 }
 0x1b5   :  { %v797_v55 = vpop.permute.xlu0 %796 }
 0x1b6   :  { %v927_v61 = vrot.slane %v797_v55, %v2118_v43  ;;  %v899_v62 = vsel %vm251_vm2, %v898_v58, %v894_v54  ;;  %v399_v54 = vld [vmem:[%s2340_s5 + $0x10] sm:$0xff]  ;;  %v400_v55 = vld [vmem:[%s2340_s5 + $0x18] sm:$0xff] }
 0x1b7   :  { %v809_v0 = vpop.permute.xlu1 %808  ;;  %v1682_v58 = vpack.c.bf16 %v400_v55, %v399_v54 }
 0x1b8   :  { %v946_v2 = vrot.slane %v809_v0, %v2118_v43  ;;  %v928_v5 = vsel %vm265_vm4, %v927_v61, %v923_v4  ;;  %v365_v61 = vunpack.c.0.s8 %v364_v60  ;;  %v1510_v4 = vld [vmem:[#allocation7] ss:$0 sm:$0xff] }
 0x1b9   :  { %v818_v1 = vpop.permute.xlu0 %817 }
 0x1ba   :  { %v947_v6 = vsel %vm265_vm4, %v946_v2, %v942_v3  ;;  %v960_v19 = vrot.slane %v818_v1, %v2113_v38  ;;  %v2236_v2 = vsub.s32 %v365_v61, %v2104_v28 }
 0x1bb   :  { %v991_v7 = vsel %vm286_vm5, %v947_v6, %v928_v5  ;;  %v824_v8 = vpop.permute.xlu1 %823 }
 0x1bc   :  { %v970_v12 = vrot.slane %v824_v8, %v2110_v35 }
 0x1bd   :  { %v827_v10 = vpop.permute.xlu0 %826 }
 0x1be   :  { %v974_v14 = vrot.slane %v827_v10, %v2107_v34  ;;  %v961_v34 = vsel %vm258_vm3, %v960_v19, %v956_v40  ;;  %v573_v19 = vsub.s32 1, %v2104_v28 }
 0x1bf   :  { %v773_v17 = vpop.permute.xlu1 %772 }
 0x1c0   :  { %v975_v15 = vsel %vm251_vm2, %v974_v14, %v970_v12  ;;  %v889_v11 = vrot.slane %v773_v17, %v2118_v43 }
 0x1c1   :  { %v782_v16 = vpop.permute.xlu0 %781 }
 0x1c2   :  { %v890_v20 = vsel %vm265_vm4, %v889_v11, %v885_v18  ;;  %v903_v30 = vrot.slane %v782_v16, %v2113_v38 }
 0x1c3   :  { %v821_v23 = vpop.permute.xlu1 %820  ;;  %v988_v24 = vsel %vm987_vm7, %v890_v20, %v986_v51  ;;  %v397_v51 = vld [vmem:[%s2340_s5] sm:$0xff] }
 0x1c4   :  { %v965_v27 = vrot.slane %v821_v23, %v2118_v43  ;;  %v904_v39 = vsel %vm258_vm3, %v903_v30, %v899_v62  ;;  %v1679_v53 = vpack.c.bf16 %v398_v52, %v397_v51  ;;  %v1507_v62 = vld [vmem:[%s2339_s4] ss:$0 sm:$0xff] }
 0x1c5   :  { %v830_v35 = vpop.permute.xlu0 %829 }
 0x1c6   :  { %v979_v31 = vrot.slane %v830_v35, %v2113_v38  ;;  %v966_v32 = vsel %vm265_vm4, %v965_v27, %v961_v34  ;;  %1680 = vmatpush3.bf16.msra.mxu1 %v1679_v53 }
 0x1c7   :  { %v785_v33 = vpop.permute.xlu1 %784  ;;  %v992_v36 = vsel %vm987_vm7, %v966_v32, %v991_v7  ;;  %1681 = vmatprep.subr.bf16.mxu1 %v1907_v63  ;;  %v387_v7 = vsub.s32 0, %v2104_v28 }
 0x1c8   :  { %v908_v37 = vrot.slane %v785_v33, %v2118_v43  ;;  %v980_v42 = vsel %vm258_vm3, %v979_v31, %v975_v15  ;;  %v2247_v15 = vld [vmem:[#allocation8] sm:$0xf] }
 0x1c9   :  { %v833_v25 = vpop.permute.xlu0 %832 }
 0x1ca   :  { %v984_v41 = vrot.slane %v833_v25, %v2118_v43  ;;  %v909_v40 = vsel %vm265_vm4, %v908_v37, %v904_v39  ;;  %v489_v43 = vld [vmem:[%s2342_s7 + $0x10] sm:$0xff]  ;;  %1683 = vmatpush3.bf16.msra.mxu1 %v1682_v58 }
 0x1cb   :  { %v2200_v45 = vsel %vm989_vm8, %v909_v40, %v988_v24  ;;  %v1688_v50 = vpack.c.bf16 %v490_v49, %v489_v43  ;;  %1690 = vmatprep.subr.bf16.mxu1 %v1907_v63 }
 0x1cc   :  { %v985_v44 = vsel %vm265_vm4, %v984_v41, %v980_v42 }
 0x1cd   :  { %v2202_v38 = vsel %vm989_vm8, %v985_v44, %v992_v36  ;;  %1689 = vmatpush3.bf16.msra.mxu0 %v1688_v50 }
 0x1ce   :  { %1696 = vmatprep.subr.bf16.mxu0 %v1907_v63 }
 0x261   :  { %v357_v0 = vpop.f32.mrb[0].mxu0 }
 0x262   :  { %v358_v1 = vadd.f32 %v1507_v62, %v357_v0  ;;  %v1583_v3 = vpop.f32.mrb[1].mxu0 }
 0x264   :  { %v361_v5 = vmul.f32 0.35355338, %v358_v1 }
 0x266   :  { %v369_v6 = vrot.slane %v361_v5, %v2236_v2  ;;  %v486_v8 = vmul.f32 %v1510_v4, %v361_v5 }
 0x268   :  { %v370_v10 = vcombine.high %v369_v6, %v369_v6  ;;  %v377_v12 = vrot.slane %v369_v6, %v2236_v2  ;;  %1604 = vmatmul.mubr.msk.f32.vlgmr.msra.gmra.mrb[2].mxu0 %vm288_vm6, %v486_v8 }
 0x269   :  { %1698 = vmatpush3.bf16.msra.mxu0 %v2078_v21  ;;  %1625 = vmatprep.mubr.msk.f32.mxu0 %vm1908_vm1, %v1909_v9 }
 0x26a   :  { %v384_v13 = vrot.slane %v370_v10, %v2236_v2  ;;  %v388_v14 = vrot.slane %v377_v12, %v387_v7  ;;  %1699 = vmatprep.subr.bf16.mxu0 %v1907_v63 }
 0x26c   :  { %v392_v17 = vrot.slane %v384_v13, %v387_v7  ;;  %v395_v16 = vmul.f32 %v388_v14, %v2247_v15  ;;  %v1265_v13 = vld [vmem:[#allocation10] sm:$0xff]  ;;  %v1266_v14 = vld [vmem:[#allocation10 + $0x8] sm:$0xff] }
 0x26d   :  { %1701 = vmatpush3.bf16.msra.mxu0 %v2085_v26 }
 0x26e   :  { %v396_v11 = vmul.f32 %v392_v17, %v2247_v15  ;;  %1710 = vmatprep.subr.bf16.mxu0 %v1907_v63  ;;  %v1719_v17 = vpack.c.bf16 %v1266_v14, %v1265_v13 }
 0x270   :  { %v403_v18 = vcombine.low %v395_v16, %v396_v11  ;;  %v1268_v16 = vld [vmem:[#allocation10 + $0x18] sm:$0xff] }
 0x272   :  { %1593 = vmatmul.mubr.msk.f32.vlgmr.msra.gmra.mrb[0].mxu1 %vm288_vm6, %v403_v18 }
 0x273   :  { %1692 = vmatpush3.bf16.msra.mxu1 %v2080_v22  ;;  %1614 = vmatprep.mubr.msk.f32.mxu1 %vm1908_vm1, %v1909_v9 }
 0x274   :  { %1693 = vmatprep.subr.bf16.mxu1 %v1907_v63 }
 0x277   :  { %1695 = vmatpush3.bf16.msra.mxu1 %v2089_v29 }
 0x278   :  { %1702 = vmatprep.subr.bf16.mxu1 %v1907_v63 }
 0x33b   :  { %v560_v20 = vpop.f32.mrb[2].mxu0 }
 0x33c   :  { %v1605_v23 = vpop.f32.mrb[3].mxu0  ;;  %v574_v24 = vrot.slane %v560_v20, %v573_v19  ;;  %v567_v35 = vrot.slane %v560_v20, %v387_v7 }
 0x33e   :  { %576 = vbcast.lane.b32.xlu0 %v574_v24, 256  ;;  %569 = vbcast.lane.b32.xlu1 %v567_v35, 256 }
 0x345   :  { %v472_v27 = vpop.f32.mrb[0].mxu1 }
 0x346   :  { %v477_v34 = vcombine.high %v472_v27, %v472_v27  ;;  %v1594_v30 = vpop.f32.mrb[1].mxu1  ;;  %1615 = vmatmul.mubr.msk.f32.vlgmr.msra.gmra.mrb[2].mxu1 %vm288_vm6, %v472_v27  ;;  %v996_v31 = vmul.f32 %v2200_v45, %v472_v27 }
 0x347   :  { %1636 = vmatprep.mubr.msk.f32.mxu1 %vm1908_vm1, %v1909_v9  ;;  %1705 = vmatpush3.bf16.xpose.msk.msra.mxu1 %vm1704_vm11, %v2080_v22 }
 0x348   :  { %1626 = vmatmul.mubr.msk.f32.vlgmr.msra.gmra.mrb[4].mxu0 %vm288_vm6, %v477_v34  ;;  %v997_v28 = vmul.f32 %v2202_v38, %v477_v34  ;;  %v999_v33 = vsel %vm998_vm9, %v996_v31, 0.0  ;;  %1706 = vmatprep.subr.bf16.mxu1 %v1907_v63 }
 0x349   :  { %1647 = vmatprep.mubr.msk.f32.mxu0 %vm1908_vm1, %v1909_v9  ;;  %1713 = vmatpush3.bf16.xpose.msk.msra.mxu0 %vm1704_vm11, %v2078_v21 }
 0x34a   :  { %v1002_v32 = vsel %vm998_vm9, %v997_v28, 0.0  ;;  %1714 = vmatprep.subr.bf16.mxu0 %v1907_v63 }
 0x34f   :  { %1709 = vmatpush3.bf16.xpose.msk.msra.mxu1 %vm1704_vm11, %v2089_v29 }
 0x350   :  { %1718 = vmatprep.subr.bf16.mxu1 %v1907_v63 }
 0x351   :  { %1717 = vmatpush3.bf16.xpose.msk.msra.mxu0 %vm1704_vm11, %v2085_v26 }
 0x352   :  { %1724 = vmatprep.subr.bf16.mxu0 %v1907_v63 }
 0x35d   :  { %1003 = vadd.xlane.f32.xlu0 %v1002_v32 }
 0x362   :  { %1000 = vadd.xlane.f32.xlu1 %v999_v33 }
 0x373   :  { %1011 = vbcast.lane.b32.xlu1 %v567_v35, 256 }
 0x3b0   :  { %v570_v36 = vpop.permute.xlu1 %569  ;;  %v577_v41 = vpop.permute.xlu0 %576 }
 0x3ea   :  { %v1004_v47 = vpop.xlane.xlu0 %1003 }
 0x3ef   :  { %v1001_v46 = vpop.xlane.xlu1 %1000 }
 0x3f3   :  { %v1012_v48 = vpop.permute.xlu1 %1011 }
 0x3f4   :  { %v1022_v43 = vadd.f32 %v1012_v48, %v1001_v46 }
 0x419   :  { %v646_v25 = vpop.f32.mrb[2].mxu1 }
 0x41a   :  { %v647_v37 = vadd.f32 %v646_v25, %v570_v36  ;;  %v1616_v39 = vpop.f32.mrb[3].mxu1 }
 0x41b   :  { %v718_v42 = vpop.f32.mrb[4].mxu0 }
 0x41c   :  { %v719_v40 = vadd.f32 %v718_v42, %v577_v41  ;;  %v1627_v44 = vpop.f32.mrb[5].mxu0  ;;  %v1025_v45 = vsel %vm1024_vm10, %v647_v37, -inf  ;;  %v1372_v41 = vld [vmem:[%s2346_s11] sm:$0xff]  ;;  %v1373_v42 = vld [vmem:[%s2346_s11 + $0x8] sm:$0xff] }
 0x41d   :  { %1026 = vmax.xlane.f32.xlu0 %v1025_v45 }
 0x41e   :  { %v1028_v38 = vsel %vm1024_vm10, %v719_v40, -inf }
 0x421   :  { %1029 = vmax.xlane.f32.xlu0 %v1028_v38 }
 0x437   :  { %1018 = vbcast.lane.b32.xlu0 %v574_v24, 256 }
 0x4aa   :  { %v1027_v49 = vpop.xlane.xlu0 %1026 }
 0x4ab   :  { %v1031_v50 = vmax.f32 %v1027_v49, %v1022_v43 }
 0x4ad   :  { %v1049_v51 = vsub.f32 %v1022_v43, %v1031_v50  ;;  %1035 = vperm.xlu1 %1746, %v1031_v50  }
 0x4ae   :  { %v1030_v52 = vpop.xlane.xlu0 %1029 }
 0x4af   :  { %v1051_v3 = vmul.f32 1.442695, %v1049_v51 }
 0x4b2   :  { %v1019_v53 = vpop.permute.xlu0 %1018 }
 0x4b3   :  { %v1023_v54 = vadd.f32 %v1019_v53, %v1004_v47 }
 0x4b5   :  { %v1032_v55 = vmax.f32 %v1030_v52, %v1023_v54 }
 0x4b7   :  { %v1050_v58 = vsub.f32 %v1023_v54, %v1032_v55  ;;  %1040 = vperm.xlu1 %1746, %v1032_v55  }
 0x4b9   :  { %v1053_v4 = vmul.f32 1.442695, %v1050_v58 }
 0x52c   :  { %v1036_v22 = vpop.permute.xlu1 %1035 }
 0x52d   :  { %v1043_v59 = vsub.f32 %v647_v37, %v1036_v22 }
 0x52f   :  { %v1045_v60 = vmul.f32 1.442695, %v1043_v59 }
 0x531   :  { %1747 = vpow2.f32 %v1045_v60 }
 0x536   :  { %v1041_v21 = vpop.permute.xlu1 %1040 }
 0x537   :  { %v1044_v61 = vsub.f32 %v719_v40, %v1041_v21  ;;  %v1375_v40 = vld [vmem:[%s2346_s11 + $0x18] sm:$0xff] }
 0x539   :  { %v1047_v62 = vmul.f32 1.442695, %v1044_v61 }
 0x53b   :  { %v1748_v0 = vpop.eup %1747  ;;  %1749 = vpow2.f32 %v1047_v62 }
 0x53c   :  { %1637 = vmatmul.mubr.msk.f32.vlgmr.msra.gmra.mrb[4].mxu1 %vm131_vm0, %v1748_v0  ;;  %v1055_v29 = vsel %vm1024_vm10, %v1748_v0, 0.0  ;;  %1751 = vpow2.f32 %v1051_v3 }
 0x53d   :  { %1056 = vadd.xlane.f32.xlu1 %v1055_v29  ;;  %1658 = vmatprep.mubr.msk.f32.mxu1 %vm1908_vm1, %v1909_v9  ;;  %1753 = vpow2.f32 %v1053_v4 }
 0x53e   :  { %1720 = vmatpush3.bf16.msra.mxu1 %v1719_v17 }
 0x53f   :  { %1721 = vmatprep.subr.bf16.mxu1 %v1907_v63 }
 0x545   :  { %v1750_v26 = vpop.eup %1749 }
 0x546   :  { %1648 = vmatmul.mubr.msk.f32.vlgmr.msra.gmra.mrb[6].mxu0 %vm131_vm0, %v1750_v26  ;;  %v1058_v1 = vsel %vm1024_vm10, %v1750_v26, 0.0  ;;  %v1752_v5 = vpop.eup %1751  ;;  %v1526_v26 = vld [vmem:[%s2347_s12] ss:$0 sm:$0xff] }
 0x547   :  { %1059 = vadd.xlane.f32.xlu0 %v1058_v1  ;;  %1669 = vmatprep.mubr.msk.f32.mxu0 %vm1908_vm1, %v1909_v9  ;;  %v1754_v8 = vpop.eup %1753  ;;  %v1267_v9 = vld [vmem:[#allocation10 + $0x10] sm:$0xff] }
 0x548   :  { %v1722_v11 = vpack.c.bf16 %v1268_v16, %v1267_v9 }
 0x54a   :  { %1723 = vmatpush3.bf16.msra.mxu1 %v1722_v11 }
 0x5ca   :  { %v1057_v6 = vpop.xlane.xlu1 %1056 }
 0x5cb   :  { %v1061_v7 = vadd.f32 %v1752_v5, %v1057_v6 }
 0x5cd   :  { %1253 = vperm.xlu0 %1745, %v1061_v7  }
 0x5d1   :  { %1070 = vperm.xlu0 %1745, %v1754_v8  }
 0x5d4   :  { %v1060_v10 = vpop.xlane.xlu0 %1059 }
 0x5d5   :  { %v1062_v12 = vadd.f32 %v1754_v8, %v1060_v10 }
 0x5d7   :  { %1258 = vperm.xlu1 %1746, %v1062_v12  }
 0x5db   :  { %1065 = vperm.xlu1 %1746, %v1752_v5  }
 0x60f   :  { %v1162_v18 = vpop.f32.mrb[4].mxu1 }
 0x610   :  { %v1638_v19 = vpop.f32.mrb[5].mxu1 }
 0x619   :  { %v1247_v20 = vpop.f32.mrb[6].mxu0 }
 0x61a   :  { %v1649_v23 = vpop.f32.mrb[7].mxu0 }
 0x64c   :  { %v1254_v24 = vpop.permute.xlu0 %1253 }
 0x64d   :  { %1755 = vrcp.f32 %v1254_v24 }
 0x650   :  { %v1071_v27 = vpop.permute.xlu0 %1070 }
 0x651   :  { %v1080_v31 = vmul.f32 %v1071_v27, %v2134_v57  ;;  %v1374_v57 = vld [vmem:[%s2346_s11 + $0x10] sm:$0xff] }
 0x652   :  { %v1728_v44 = vpack.c.bf16 %v1375_v40, %v1374_v57 }
 0x653   :  { %v1248_v33 = vadd.f32 %v1247_v20, %v1080_v31 }
 0x656   :  { %v1259_v35 = vpop.permute.xlu1 %1258 }
 0x657   :  { %1757 = vrcp.f32 %v1259_v35  ;;  %v1756_v32 = vpop.eup %1755 }
 0x65a   :  { %v1066_v34 = vpop.permute.xlu1 %1065 }
 0x65b   :  { %v1079_v30 = vmul.f32 %v1066_v34, %v2131_v56  ;;  %v1725_v56 = vpack.c.bf16 %v1373_v42, %v1372_v41 }
 0x65d   :  { %v1163_v28 = vadd.f32 %v1162_v18, %v1079_v30  ;;  %1726 = vmatpush3.bf16.msra.mxu0 %v1725_v56 }
 0x65e   :  { %1727 = vmatprep.subr.bf16.mxu0 %v1907_v63 }
 0x65f   :  { %v1262_v37 = vmul.f32 %v1756_v32, %v1163_v28 }
 0x661   :  { %v1758_v36 = vpop.eup %1757  ;;  %1729 = vmatpush3.bf16.msra.mxu0 %v1728_v44 }
 0x662   :  { %v1264_v25 = vmul.f32 %v1758_v36, %v1248_v33 }
 0x664   :  { %v1271_v39 = vcombine.low %v1262_v37, %v1264_v25 }
 0x666   :  { %1659 = vmatmul.mubr.msk.f32.vlgmr.msra.gmra.mrb[6].mxu1 %vm288_vm6, %v1271_v39 }
 0x739   :  { %v1340_v45 = vpop.f32.mrb[6].mxu1 }
 0x73a   :  { %v1345_v38 = vcombine.high %v1340_v45, %v1340_v45  ;;  %v1347_v46 = vmul.f32 %v1340_v45, %v2247_v15  ;;  %v1660_v47 = vpop.f32.mrb[7].mxu1 }
 0x73c   :  { %v1348_v48 = vmul.f32 %v1345_v38, %v2247_v15  ;;  %v1349_v43 = vsel %vm998_vm9, %v1347_v46, 0.0  ;;  %v1525_v15 = vld [vmem:[%s2345_s10] ss:$0 sm:$0xff]  ;;  %s1869_s10 = scalar_lea.vmem %s1493_s17, 32 }
 0x73d   :  { %v1350_v49 = vrot.slane %v1349_v43, 4  ;;  %p1870_p12 = scmp.ne.s32.totalorder %s1493_s17, %s1869_s10  ;;  %p1875_p0 = scmp.lt.s32.totalorder %s1869_s10, %s1869_s10 }
 0x73e   :  { %v1356_v50 = vsel %vm998_vm9, %v1348_v48, 0.0 }
 0x73f   :  { %v1351_v51 = vadd.f32 %v1350_v49, %v1349_v43  ;;  %v1357_v52 = vrot.slane %v1356_v50, 4  ;;  %p1876_p1 = por %p1875_p0, %p1874_p13 }
 0x741   :  { %v1352_v53 = vrot.slane %v1351_v51, 2  ;;  %v1358_v54 = vadd.f32 %v1357_v52, %v1356_v50  ;;  %p1877_p2 = pnand %p1876_p1, %p1870_p12 }
 0x743   :  { %v1353_v55 = vadd.f32 %v1352_v53, %v1351_v51  ;;  %v1359_v63 = vrot.slane %v1358_v54, 2 }
 0x745   :  { %v1354_v58 = vrot.slane %v1353_v55, 1  ;;  %v1360_v22 = vadd.f32 %v1359_v63, %v1358_v54 }
 0x747   :  { %v1361_v59 = vrot.slane %v1360_v22, 1  ;;  %v1355_v60 = vadd.f32 %v1354_v58, %v1353_v55 }
 0x749   :  { %v1362_v21 = vadd.f32 %v1361_v59, %v1360_v22  ;;  %v1370_v62 = vadd.f32 %v1525_v15, %v1355_v60 }
 0x74b   :  { %v1371_v61 = vadd.f32 %v1525_v15, %v1362_v21 }
 0x74d   :  { %v1385_v0 = vrot.slane %v1371_v61, 7 }
 0x74f   :  { %v1386_v29 = vsel %vm286_vm5, %v1385_v0, %v1370_v62 }
 0x750   :  { %1670 = vmatmul.mubr.msk.f32.vlgmr.msra.gmra.mrb[8].mxu0 %vm288_vm6, %v1386_v29 }
 0x823   :  { %v1455_v1 = vpop.f32.mrb[8].mxu0 }
 0x824   :  { %v1456_v3 = vadd.f32 %v1526_v26, %v1455_v1  ;;  %v1671_v4 = vpop.f32.mrb[9].mxu0 }
 0x826   :  { %v1466_v5 = vrot.slane %v1456_v3, %v2236_v2 }
 0x828   :  { %v1467_v6 = vcombine.high %v1466_v5, %v1466_v5  ;;  %v1474_v7 = vrot.slane %v1466_v5, %v2236_v2 }
 0x82a   :  { %v1481_v8 = vrot.slane %v1467_v6, %v2236_v2  ;;  %1485 = vst.msk [vmem:[#allocation11] sm:$0x1] %vm1484_vm12, %v1474_v7 }
 0x82c   :  { %1486 = vst.msk [vmem:[#allocation11 + $0x1] sm:$0x1] %vm1484_vm12, %v1481_v8 }
 0x82d   :  { %1880 = shalt.err (!%p1877_p2)
}
 0x82e   :  { %s1881_s22 = scalar_lea.hbm %s2348_s13, 32 }
 0x82f   :  { %p1882_p3 = scmp.ne.s32.totalorder %s2348_s13, %s1881_s22  ;;  %p1885_p4 = scmp.lt.u32.totalorder %s1881_s22, %s2348_s13 }
 0x831   :  { %p1887_p5 = pnand %p1885_p4, %p1882_p3 }
 0x833   :  { %1890 = shalt.err (!%p1887_p5)
}
 0x834   :  { %s1912_s9 = smov 16   ;;  %s1913_s20 = smov 1  }
 0x835   :  { %1498 = dma.vmem_to_hbm [thread:$0]  %s1493_s17, 32, %s2348_s13, [#allocation4], %s1912_s9, %s1912_s9, %s1913_s20  }
 0x836   :  { %1897 = dma.done.wait [#allocation4], 32  }
 0x837   :  { %1898 = vsyncadd [#allocation4], 4294967264 }
 0x838   :  { %1502 = vsyncpa [#allocation3], 1 }
 0x839   :  { %1503 = vsyncpa [#allocation6], 1 }
 0x83a   :  { %1504 = vsyncpa [#allocation9], 1 }
 0x83b   :  { %1505 = vsyncpa [#allocation4], 1 }

</bundles_post_ra>
